<compile_context>
chip_gen: v7x
topology: tpu7x:2x2x1
jax: 0.10.0
libtpu: 0.0.40
codegen_flags: <defaults>
</compile_context>

<pallas_src>
import functools

import jax
import jax.numpy as jnp
from jax.experimental import pallas as pl
from jax.experimental.pallas import tpu as pltpu


def adaptive_group_norm_kernel(x_ref, q_ref, p_ref, o_ref, *,
                               num_groups, z_channels, gn_eps, var_eps):
    """One batch-block per grid step.

    x_ref : (Bb, C, H*W)       feature map; channels on sublanes, pixels on lanes
    q_ref : (Bb, Cz, Hq*Wq)    quantizer; z-channels on sublanes, pixels on lanes
    p_ref : (C, 2*Cz + 2)      packed params [gamma_w | beta_w | gamma_b | beta_b]
    o_ref : (Bb, C, H*W)
    """
    Bb, C, HW = x_ref.shape
    _, Cz, HqWq = q_ref.shape
    G = num_groups
    Cg = C // G
    assert Cz == z_channels

    # ---- quantizer statistics (one pass): per-z-channel mean / unbiased std --
    qz = q_ref[...].astype(jnp.float32)                       # (Bb, Cz, HqWq)
    q_sum = jnp.sum(qz, axis=-1)                              # (Bb, Cz)  lanes=Cz
    q_sq = jnp.sum(qz * qz, axis=-1)                          # (Bb, Cz)
    q_mean = q_sum * (1.0 / float(HqWq))
    # torch Tensor.var(dim=-1) defaults to unbiased => divide by N-1.
    q_var = (q_sq - float(HqWq) * q_mean * q_mean) * (1.0 / float(HqWq - 1))
    q_std = jnp.sqrt(q_var + var_eps)                         # (Bb, Cz)

    # ---- adaptive scale/bias: Linear(Cz -> C) as broadcast-mul + lane reduce --
    # (K = Cz = 4 is far too small for any MXU occupancy.)
    p = p_ref[...]
    gw = p[:, 0:Cz][None]                                     # (1, C, Cz)
    bw = p[:, Cz:2 * Cz][None]                                # (1, C, Cz)
    gb = p[:, 2 * Cz:2 * Cz + 1][None]                        # (1, C, 1)
    bb = p[:, 2 * Cz + 1:2 * Cz + 2][None]                    # (1, C, 1)
    scale_c = jnp.sum(gw * q_std[:, None, :], axis=-1, keepdims=True) + gb   # (Bb,C,1)
    bias_c = jnp.sum(bw * q_mean[:, None, :], axis=-1, keepdims=True) + bb   # (Bb,C,1)

    # ---- GroupNorm stats in ONE sweep: sum(x) and sum(x*x) -------------------
    xc = x_ref[...].astype(jnp.float32)                       # (Bb, C, HW)
    ch_sum = jnp.sum(xc, axis=-1, keepdims=True)              # (Bb, C, 1)
    ch_sq = jnp.sum(xc * xc, axis=-1, keepdims=True)          # (Bb, C, 1)
    if Cg == 1:
        # groups == channels: per-channel sums ARE the group sums (no relayout)
        g_sum, g_sq = ch_sum, ch_sq                           # (Bb, G, 1)
    else:
        # tiny (Bb*C-element) column relayout; negligible vs the (C,HW) sweeps
        g_sum = jnp.sum(ch_sum.reshape(Bb, G, Cg), axis=-1, keepdims=True)
        g_sq = jnp.sum(ch_sq.reshape(Bb, G, Cg), axis=-1, keepdims=True)
    inv_n = 1.0 / float(Cg * HW)
    g_mean = g_sum * inv_n                                    # (Bb, G, 1)
    g_var = g_sq * inv_n - g_mean * g_mean                    # biased (nn.GroupNorm)
    g_inv = jax.lax.rsqrt(g_var + gn_eps)                     # EUP slot
    if Cg == 1:
        c_mean, c_inv = g_mean, g_inv                         # (Bb, C, 1)
    else:
        c_mean = jnp.broadcast_to(g_mean, (Bb, G, Cg)).reshape(Bb, C, 1)
        c_inv = jnp.broadcast_to(g_inv, (Bb, G, Cg)).reshape(Bb, C, 1)

    # ---- single fused epilogue: out = a*x + (bias - a*mean) ------------------
    a = scale_c * c_inv                                       # (Bb, C, 1)
    b = bias_c - a * c_mean                                   # mean folded in
    o_ref[...] = (a * xc + b).astype(o_ref.dtype)


def _pick_batch_block(B, C, HW, itemsize):
    """Fold as much batch as comfortably fits VMEM into one grid step."""
    per_b = C * HW * max(int(itemsize), 4)      # f32 working set dominates
    budget = 12 * 1024 * 1024                   # conservative: fits default scoped VMEM
    bb = max(1, min(B, budget // max(1, 7 * per_b)))
    while B % bb:                               # avoid padded partial blocks
        bb -= 1
    return bb


def adaptive_group_norm(x, quantizer, gamma_w, gamma_b, beta_w, beta_b,
                        *, num_groups=32, eps=1e-6, batch_block=None):
    """Forward pass of AdaptiveGroupNorm. x: [B, C, H, W] -> [B, C, H, W]."""
    B, C, H, W = x.shape
    Bq, Cz, Hq, Wq = quantizer.shape
    HW = H * W
    HqWq = Hq * Wq
    assert Bq == B
    assert C % num_groups == 0, "GroupNorm(32) requires C % 32 == 0"

    if batch_block is None:
        # On v7x (2 TensorCores) pass batch_block = ceil(B/2) explicitly to let
        # the batch axis megacore-shard; default folds the whole batch, which
        # is best for single-TC v5e/v6e.
        batch_block = _pick_batch_block(B, C, HW, jnp.dtype(x.dtype).itemsize)
    num_blocks = pl.cdiv(B, batch_block)

    # Free reshapes: channels stay on sublanes, all pixels on the lane axis.
    x2 = x.reshape(B, C, HW)
    q2 = quantizer.reshape(B, Cz, HqWq)           # no XLA transpose dispatch
    # Pack the 4 tiny parameter tensors into ONE resident VMEM array.
    params = jnp.concatenate(
        [gamma_w, beta_w, gamma_b.reshape(C, 1), beta_b.reshape(C, 1)],
        axis=1)                                   # (C, 2*Cz + 2)

    kernel = functools.partial(adaptive_group_norm_kernel,
                               num_groups=num_groups, z_channels=Cz,
                               gn_eps=eps, var_eps=eps)

    # VMEM budget: x/out blocks double-buffered + f32 working copies + q + params.
    x_block = batch_block * C * HW * jnp.dtype(x.dtype).itemsize
    f32_block = batch_block * C * HW * 4
    q_block = batch_block * Cz * max(HqWq, 128) * jnp.dtype(quantizer.dtype).itemsize
    needed = 4 * x_block + 3 * f32_block + 2 * q_block + 4 * C * (2 * Cz + 2) * 4
    vmem_limit = int(min(64 * 1024 * 1024, max(2 * needed, 16 * 1024 * 1024)))

    out = pl.pallas_call(
        kernel,
        out_shape=jax.ShapeDtypeStruct((B, C, HW), x.dtype),
        grid_spec=pltpu.PrefetchScalarGridSpec(
            num_scalar_prefetch=0,
            grid=(num_blocks,),
            in_specs=[
                pl.BlockSpec((batch_block, C, HW), lambda b: (b, 0, 0)),     # x
                pl.BlockSpec((batch_block, Cz, HqWq), lambda b: (b, 0, 0)),  # quantizer
                pl.BlockSpec((C, 2 * Cz + 2), lambda b: (0, 0)),             # params (resident)
            ],
            out_specs=pl.BlockSpec((batch_block, C, HW), lambda b: (b, 0, 0)),
        ),
        compiler_params=pltpu.CompilerParams(
            dimension_semantics=("parallel",),
            vmem_limit_bytes=vmem_limit),
    )(x2, q2, params)

    return out.reshape(B, C, H, W)


def _reference(x, quantizer, gamma_w, gamma_b, beta_w, beta_b,
               num_groups=32, eps=1e-6):
    """Pure-JAX mirror of the PyTorch module's forward."""
    B, C, H, W = x.shape
    q = quantizer.reshape(B, quantizer.shape[1], -1)
    std = jnp.sqrt(jnp.var(q, axis=-1, ddof=1) + eps)   # torch .var(): unbiased
    mean = jnp.mean(q, axis=-1)
    scale = (std @ gamma_w.T + gamma_b)[:, :, None, None]
    bias = (mean @ beta_w.T + beta_b)[:, :, None, None]
    xg = x.reshape(B, num_groups, -1)
    gm = jnp.mean(xg, axis=-1, keepdims=True)
    gv = jnp.var(xg, axis=-1, keepdims=True)             # biased, as nn.GroupNorm
    xn = ((xg - gm) * jax.lax.rsqrt(gv + eps)).reshape(B, C, H, W)
    return scale * xn + bias


if __name__ == "__main__":
    # Module config: in_filters must be divisible by the hard-coded 32 groups.
    B, C, H, W = 2, 32, 16, 16        # x: feature map (in_filters = 32)
    Cz, Hq, Wq = 4, 8, 8              # quantizer: z_channel = 4 latent

    key = jax.random.PRNGKey(0)
    kx, kq, kgw, kgb, kbw, kbb = jax.random.split(key, 6)
    x = jax.random.normal(kx, (B, C, H, W), dtype=jnp.float32)
    quantizer = jax.random.normal(kq, (B, Cz, Hq, Wq), dtype=jnp.float32)
    # Deterministic synthetic parameters for gamma/beta = nn.Linear(Cz, C).
    gamma_w = jax.random.normal(kgw, (C, Cz), dtype=jnp.float32) * 0.1
    gamma_b = jax.random.normal(kgb, (C,), dtype=jnp.float32) * 0.1
    beta_w = jax.random.normal(kbw, (C, Cz), dtype=jnp.float32) * 0.1
    beta_b = jax.random.normal(kbb, (C,), dtype=jnp.float32) * 0.1

    out = jax.jit(adaptive_group_norm)(x, quantizer, gamma_w, gamma_b,
                                       beta_w, beta_b)
    out = jax.block_until_ready(out)
    assert out.shape == (B, C, H, W), out.shape

    ref = _reference(x, quantizer, gamma_w, gamma_b, beta_w, beta_b)
    max_err = float(jnp.max(jnp.abs(out - ref)))
    assert jnp.allclose(out, ref, atol=1e-4, rtol=1e-4), max_err

    print("KERNEL_OK")
</pallas_src>

<mosaic_0001>
module attributes {stable_mosaic.version = 11 : i64} {
  func.func @adaptive_group_norm_kernel(%arg0: i32, %arg1: memref<2x32x256xf32, #tpu.memory_space<vmem>>, %arg2: memref<2x4x64xf32, #tpu.memory_space<vmem>>, %arg3: memref<32x10xf32, #tpu.memory_space<vmem>>, %arg4: memref<2x32x256xf32, #tpu.memory_space<vmem>>) attributes {dimension_semantics = [#tpu.dimension_semantics<parallel>], iteration_bounds = array<i64: 1>, scalar_prefetch = 0 : i64, scratch_operands = 0 : i64, tpu.core_type = #tpu.core_type<tc>, window_params = [{transform_indices = @transform_0, window_bounds = array<i64: 2, 32, 256>}, {transform_indices = @transform_1, window_bounds = array<i64: 2, 4, 64>}, {pipeline_mode = #tpu.pipeline_mode<synchronous>, transform_indices = @transform_2, window_bounds = array<i64: 32, 10>}, {transform_indices = @transform_3, window_bounds = array<i64: 2, 32, 256>}]} {
    %c0 = arith.constant 0 : index
    %c0_0 = arith.constant 0 : index
    %c0_1 = arith.constant 0 : index
    %0 = vector.load %arg2[%c0, %c0_0, %c0_1] : memref<2x4x64xf32, #tpu.memory_space<vmem>>, vector<2x4x64xf32>
    %cst = arith.constant dense<0.000000e+00> : vector<2x4xf32>
    %1 = vector.multi_reduction <add>, %0, %cst [2] : vector<2x4x64xf32> to vector<2x4xf32>
    %2 = arith.mulf %0, %0 : vector<2x4x64xf32>
    %cst_2 = arith.constant dense<0.000000e+00> : vector<2x4xf32>
    %3 = vector.multi_reduction <add>, %2, %cst_2 [2] : vector<2x4x64xf32> to vector<2x4xf32>
    %cst_3 = arith.constant 1.562500e-02 : f32
    %4 = vector.broadcast %cst_3 : f32 to vector<2x4xf32>
    %5 = arith.mulf %1, %4 : vector<2x4xf32>
    %cst_4 = arith.constant 6.400000e+01 : f32
    %6 = vector.broadcast %cst_4 : f32 to vector<2x4xf32>
    %7 = arith.mulf %6, %5 : vector<2x4xf32>
    %8 = arith.mulf %7, %5 : vector<2x4xf32>
    %9 = arith.subf %3, %8 : vector<2x4xf32>
    %cst_5 = arith.constant 0.0158730168 : f32
    %10 = vector.broadcast %cst_5 : f32 to vector<2x4xf32>
    %11 = arith.mulf %9, %10 : vector<2x4xf32>
    %cst_6 = arith.constant 9.99999997E-7 : f32
    %12 = vector.broadcast %cst_6 : f32 to vector<2x4xf32>
    %13 = arith.addf %11, %12 : vector<2x4xf32>
    %14 = math.sqrt %13 : vector<2x4xf32>
    %c0_7 = arith.constant 0 : index
    %c0_8 = arith.constant 0 : index
    %15 = vector.load %arg3[%c0_7, %c0_8] : memref<32x10xf32, #tpu.memory_space<vmem>>, vector<32x10xf32>
    %16 = vector.extract_strided_slice %15 {offsets = [0, 0], sizes = [32, 4], strides = [1, 1]} : vector<32x10xf32> to vector<32x4xf32>
    %17 = vector.shape_cast %16 : vector<32x4xf32> to vector<1x32x4xf32>
    %18 = vector.extract_strided_slice %15 {offsets = [0, 4], sizes = [32, 4], strides = [1, 1]} : vector<32x10xf32> to vector<32x4xf32>
    %19 = vector.shape_cast %18 : vector<32x4xf32> to vector<1x32x4xf32>
    %20 = vector.extract_strided_slice %15 {offsets = [0, 8], sizes = [32, 1], strides = [1, 1]} : vector<32x10xf32> to vector<32x1xf32>
    %21 = vector.shape_cast %20 : vector<32x1xf32> to vector<1x32x1xf32>
    %22 = vector.extract_strided_slice %15 {offsets = [0, 9], sizes = [32, 1], strides = [1, 1]} : vector<32x10xf32> to vector<32x1xf32>
    %23 = vector.shape_cast %22 : vector<32x1xf32> to vector<1x32x1xf32>
    %24 = vector.shape_cast %14 : vector<2x4xf32> to vector<2x1x4xf32>
    %25 = vector.broadcast %17 : vector<1x32x4xf32> to vector<2x32x4xf32>
    %26 = vector.broadcast %24 : vector<2x1x4xf32> to vector<2x32x4xf32>
    %27 = arith.mulf %25, %26 : vector<2x32x4xf32>
    %cst_9 = arith.constant dense<0.000000e+00> : vector<2x32xf32>
    %28 = vector.multi_reduction <add>, %27, %cst_9 [2] : vector<2x32x4xf32> to vector<2x32xf32>
    %29 = vector.shape_cast %28 : vector<2x32xf32> to vector<2x32x1xf32>
    %30 = vector.broadcast %21 : vector<1x32x1xf32> to vector<2x32x1xf32>
    %31 = arith.addf %29, %30 : vector<2x32x1xf32>
    %32 = vector.shape_cast %5 : vector<2x4xf32> to vector<2x1x4xf32>
    %33 = vector.broadcast %19 : vector<1x32x4xf32> to vector<2x32x4xf32>
    %34 = vector.broadcast %32 : vector<2x1x4xf32> to vector<2x32x4xf32>
    %35 = arith.mulf %33, %34 : vector<2x32x4xf32>
    %cst_10 = arith.constant dense<0.000000e+00> : vector<2x32xf32>
    %36 = vector.multi_reduction <add>, %35, %cst_10 [2] : vector<2x32x4xf32> to vector<2x32xf32>
    %37 = vector.shape_cast %36 : vector<2x32xf32> to vector<2x32x1xf32>
    %38 = vector.broadcast %23 : vector<1x32x1xf32> to vector<2x32x1xf32>
    %39 = arith.addf %37, %38 : vector<2x32x1xf32>
    %c0_11 = arith.constant 0 : index
    %c0_12 = arith.constant 0 : index
    %c0_13 = arith.constant 0 : index
    %40 = vector.load %arg1[%c0_11, %c0_12, %c0_13] : memref<2x32x256xf32, #tpu.memory_space<vmem>>, vector<2x32x256xf32>
    %cst_14 = arith.constant dense<0.000000e+00> : vector<2x32xf32>
    %41 = vector.multi_reduction <add>, %40, %cst_14 [2] : vector<2x32x256xf32> to vector<2x32xf32>
    %42 = vector.shape_cast %41 : vector<2x32xf32> to vector<2x32x1xf32>
    %43 = arith.mulf %40, %40 : vector<2x32x256xf32>
    %cst_15 = arith.constant dense<0.000000e+00> : vector<2x32xf32>
    %44 = vector.multi_reduction <add>, %43, %cst_15 [2] : vector<2x32x256xf32> to vector<2x32xf32>
    %45 = vector.shape_cast %44 : vector<2x32xf32> to vector<2x32x1xf32>
    %cst_16 = arith.constant 3.906250e-03 : f32
    %46 = vector.broadcast %cst_16 : f32 to vector<2x32x1xf32>
    %47 = arith.mulf %42, %46 : vector<2x32x1xf32>
    %cst_17 = arith.constant 3.906250e-03 : f32
    %48 = vector.broadcast %cst_17 : f32 to vector<2x32x1xf32>
    %49 = arith.mulf %45, %48 : vector<2x32x1xf32>
    %50 = arith.mulf %47, %47 : vector<2x32x1xf32>
    %51 = arith.subf %49, %50 : vector<2x32x1xf32>
    %cst_18 = arith.constant 9.99999997E-7 : f32
    %52 = vector.broadcast %cst_18 : f32 to vector<2x32x1xf32>
    %53 = arith.addf %51, %52 : vector<2x32x1xf32>
    %54 = math.rsqrt %53 : vector<2x32x1xf32>
    %55 = arith.mulf %31, %54 : vector<2x32x1xf32>
    %56 = arith.mulf %55, %47 : vector<2x32x1xf32>
    %57 = arith.subf %39, %56 : vector<2x32x1xf32>
    %58 = vector.broadcast %55 : vector<2x32x1xf32> to vector<2x32x256xf32>
    %59 = arith.mulf %58, %40 : vector<2x32x256xf32>
    %60 = vector.broadcast %57 : vector<2x32x1xf32> to vector<2x32x256xf32>
    %61 = arith.addf %59, %60 : vector<2x32x256xf32>
    %c0_19 = arith.constant 0 : index
    %c0_20 = arith.constant 0 : index
    %c0_21 = arith.constant 0 : index
    %62 = vector.load %arg4[%c0_19, %c0_20, %c0_21] : memref<2x32x256xf32, #tpu.memory_space<vmem>>, vector<2x32x256xf32>
    tpu.vector_store %arg4[%c0_19, %c0_20, %c0_21], %61 {strides = array<i32>} : memref<2x32x256xf32, #tpu.memory_space<vmem>>, vector<2x32x256xf32>,
    return
  }
  func.func @transform_0(%arg0: i32) -> (i32, i32, i32) {
    %c0_i32 = arith.constant 0 : i32
    %c0_i32_0 = arith.constant 0 : i32
    %c0_i32_1 = arith.constant 0 : i32
    return %arg0, %c0_i32, %c0_i32_0 : i32, i32, i32
  }
  func.func @transform_1(%arg0: i32) -> (i32, i32, i32) {
    %c0_i32 = arith.constant 0 : i32
    %c0_i32_0 = arith.constant 0 : i32
    %c0_i32_1 = arith.constant 0 : i32
    return %arg0, %c0_i32, %c0_i32_0 : i32, i32, i32
  }
  func.func @transform_2(%arg0: i32) -> (i32, i32) {
    %c0_i32 = arith.constant 0 : i32
    %c0_i32_0 = arith.constant 0 : i32
    %c0_i32_1 = arith.constant 0 : i32
    return %c0_i32, %c0_i32_0 : i32, i32
  }
  func.func @transform_3(%arg0: i32) -> (i32, i32, i32) {
    %c0_i32 = arith.constant 0 : i32
    %c0_i32_0 = arith.constant 0 : i32
    %c0_i32_1 = arith.constant 0 : i32
    return %arg0, %c0_i32, %c0_i32_0 : i32, i32, i32
  }
}

</mosaic_0001>

<bundles_post_ra>
// kernel: adaptive_group_norm.1
= control target key start
LH: loop header
LB: loop body
LE: loop exit
PB: predicated region body
PF: predicated region fallthrough
CT: control target
= control target key end

     0   :  { %vm16_vm0 = vcmask 519168   ;;  %v63_v56 = vlaneseq  ;;  %s575_s24 = smov 124   ;;  %vm101_vm5 = vcmask 31744   ;;  %s981_s1 = inlined_call_operand.vmem [shape: f32[2,4,64], index: 1, kind: input, shape index: {}]   ;;  %s982_s0 = inlined_call_operand.vmem [shape: f32[2,32,256], index: 0, kind: input, shape index: {}]   ;;  %s983_s2 = inlined_call_operand.vmem [shape: f32[32,10], index: 2, kind: input, shape index: {}]   ;;  %s984_s3 = inlined_call_operand.vmem [shape: f32[2,32,256], index: 3, kind: output, shape index: {}]  }
   0x1   :  { %v14_v0 = vld [vmem:[%s981_s1] sm:$0xf]  ;;  %v15_v1 = vld [vmem:[%s981_s1 + $0x4] sm:$0xf]  ;;  %v613_v8 = vld [vmem:[%s982_s0 + $0x8] sm:$0xff] }
   0x2   :  { %v17_v2 = vsel %vm16_vm0, %v14_v0, 0.0  ;;  %v23_v3 = vmul.f32 %v14_v0, %v14_v0  ;;  %v24_v4 = vmul.f32 %v15_v1, %v15_v1  ;;  %v20_v5 = vsel %vm16_vm0, %v15_v1, 0.0  ;;  %v608_v7 = vld [vmem:[%s982_s0] sm:$0xff]  ;;  %v618_v10 = vld [vmem:[%s982_s0 + $0x10] sm:$0xff]  ;;  %v623_v11 = vld [vmem:[%s982_s0 + $0x18] sm:$0xff] }
   0x3   :  { %18 = vadd.xlane.f32.xlu0 %v17_v2  ;;  %v247_v12 = vadd.f32 %v613_v8, %v608_v7  ;;  %v630_v13 = vld [vmem:[%s982_s0 + $0x20] sm:$0xff]  ;;  %v635_v14 = vld [vmem:[%s982_s0 + $0x28] sm:$0xff]  ;;  %v250_v15 = vadd.f32 %v623_v11, %v618_v10  ;;  %v642_v16 = vld [vmem:[%s982_s0 + $0x30] sm:$0xff]  ;;  %v271_v31 = vmul.f32 %v608_v7, %v608_v7  ;;  %v272_v32 = vmul.f32 %v613_v8, %v613_v8 }
   0x4   :  { %v25_v6 = vsel %vm16_vm0, %v23_v3, 0.0  ;;  %v28_v9 = vsel %vm16_vm0, %v24_v4, 0.0  ;;  %v647_v17 = vld [vmem:[%s982_s0 + $0x38] sm:$0xff]  ;;  %v253_v18 = vadd.f32 %v635_v14, %v630_v13  ;;  %v654_v19 = vld [vmem:[%s982_s0 + $0x40] sm:$0xff]  ;;  %v659_v20 = vld [vmem:[%s982_s0 + $0x48] sm:$0xff]  ;;  %v273_v34 = vmul.f32 %v618_v10, %v618_v10 }
   0x5   :  { %26 = vadd.xlane.f32.xlu1 %v25_v6  ;;  %v256_v21 = vadd.f32 %v647_v17, %v642_v16  ;;  %v666_v22 = vld [vmem:[%s982_s0 + $0x50] sm:$0xff]  ;;  %v671_v23 = vld [vmem:[%s982_s0 + $0x58] sm:$0xff]  ;;  %v259_v24 = vadd.f32 %v659_v20, %v654_v19  ;;  %v678_v25 = vld [vmem:[%s982_s0 + $0x60] sm:$0xff]  ;;  %v274_v35 = vmul.f32 %v623_v11, %v623_v11  ;;  %v287_v36 = vadd.f32 %v272_v32, %v271_v31 }
   0x6   :  { %v683_v26 = vld [vmem:[%s982_s0 + $0x68] sm:$0xff]  ;;  %v262_v27 = vadd.f32 %v671_v23, %v666_v22  ;;  %v690_v28 = vld [vmem:[%s982_s0 + $0x70] sm:$0xff]  ;;  %v695_v29 = vld [vmem:[%s982_s0 + $0x78] sm:$0xff]  ;;  %v275_v37 = vmul.f32 %v630_v13, %v630_v13  ;;  %v276_v38 = vmul.f32 %v635_v14, %v635_v14  ;;  %v277_v40 = vmul.f32 %v642_v16, %v642_v16 }
   0x7   :  { %21 = vadd.xlane.f32.xlu0 %v20_v5  ;;  %v265_v30 = vadd.f32 %v683_v26, %v678_v25  ;;  %v268_v33 = vadd.f32 %v695_v29, %v690_v28  ;;  %v290_v39 = vadd.f32 %v274_v35, %v273_v34  ;;  %v278_v41 = vmul.f32 %v647_v17, %v647_v17  ;;  %v742_v0 = vld [vmem:[%s983_s2 + $0x8] sm:$0xff]  ;;  %v747_v1 = vld [vmem:[%s983_s2] sm:$0xff]  ;;  %v766_v35 = vld [vmem:[%s983_s2 + $0x18] sm:$0xff] }
   0x8   :  { %v293_v42 = vadd.f32 %v276_v38, %v275_v37  ;;  %v279_v43 = vmul.f32 %v654_v19, %v654_v19  ;;  %v280_v44 = vmul.f32 %v659_v20, %v659_v20  ;;  %v281_v46 = vmul.f32 %v666_v22, %v666_v22 }
   0x9   :  { %29 = vadd.xlane.f32.xlu1 %v28_v9  ;;  %v296_v45 = vadd.f32 %v278_v41, %v277_v40  ;;  %v282_v47 = vmul.f32 %v671_v23, %v671_v23  ;;  %v283_v49 = vmul.f32 %v678_v25, %v678_v25  ;;  %v284_v50 = vmul.f32 %v683_v26, %v683_v26 }
   0xa   :  { %v299_v48 = vadd.f32 %v280_v44, %v279_v43  ;;  %v285_v52 = vmul.f32 %v690_v28, %v690_v28  ;;  %v286_v53 = vmul.f32 %v695_v29, %v695_v29  ;;  %v733_v57 = vand.u32 127, %v63_v56 }
   0xb   :  { %248 = vadd.xlane.f32.xlu0 %v247_v12  ;;  %v302_v51 = vadd.f32 %v282_v47, %v281_v46  ;;  %v305_v54 = vadd.f32 %v284_v50, %v283_v49  ;;  %v735_v58 = vshrl.u32 %v63_v56, 7 }
   0xc   :  { %v308_v55 = vadd.f32 %v286_v53, %v285_v52  ;;  %v136_v59 = vadd.s32 4294967292, %v733_v57 }
   0xd   :  { %251 = vadd.xlane.f32.xlu1 %v250_v15 }
   0xe   :  { %v139_v60 = vsub.s32 %v136_v59, %v735_v58 }
   0xf   :  { %254 = vadd.xlane.f32.xlu0 %v253_v18  ;;  %v754_v18 = vld [vmem:[%s983_s2 + $0x10] sm:$0xff]  ;;  %s577_s2 = smov 1  }
  0x11   :  { %257 = vadd.xlane.f32.xlu1 %v256_v21 }
  0x13   :  { %260 = vadd.xlane.f32.xlu0 %v259_v24 }
  0x15   :  { %263 = vadd.xlane.f32.xlu1 %v262_v27 }
  0x17   :  { %266 = vadd.xlane.f32.xlu0 %v265_v30 }
  0x19   :  { %269 = vadd.xlane.f32.xlu1 %v268_v33 }
  0x1b   :  { %288 = vadd.xlane.f32.xlu0 %v287_v36 }
  0x1d   :  { %291 = vadd.xlane.f32.xlu1 %v290_v39 }
  0x1f   :  { %294 = vadd.xlane.f32.xlu0 %v293_v42 }
  0x21   :  { %297 = vadd.xlane.f32.xlu1 %v296_v45 }
  0x23   :  { %300 = vadd.xlane.f32.xlu0 %v299_v48 }
  0x25   :  { %303 = vadd.xlane.f32.xlu1 %v302_v51 }
  0x27   :  { %306 = vadd.xlane.f32.xlu0 %v305_v54 }
  0x29   :  { %309 = vadd.xlane.f32.xlu1 %v308_v55 }
  0x90   :  { %v19_v61 = vpop.xlane.xlu0 %18 }
  0x91   :  { %v31_v62 = vmul.f32 0.015625, %v19_v61 }
  0x92   :  { %v27_v63 = vpop.xlane.xlu1 %26 }
  0x93   :  { %v140_v2 = vrot.slane %v31_v62, %v139_v60  ;;  %v33_v3 = vmul.f32 64.0, %v31_v62 }
  0x94   :  { %v22_v4 = vpop.xlane.xlu0 %21 }
  0x95   :  { %v32_v5 = vmul.f32 0.015625, %v22_v4  ;;  %v35_v6 = vmul.f32 %v33_v3, %v31_v62  ;;  %v160_v9 = vmul.f32 %v140_v2, %v742_v0  ;;  %v159_v12 = vmul.f32 %v140_v2, %v747_v1 }
  0x96   :  { %v30_v15 = vpop.xlane.xlu1 %29  ;;  %v161_v33 = vmul.f32 %v140_v2, %v754_v18  ;;  %v162_v41 = vmul.f32 %v140_v2, %v766_v35  ;;  %v67_v4 = vsub.s32 %v733_v57, %v735_v58 }
  0x97   :  { %v756_v21 = vrot.slane %v32_v5, %v139_v60  ;;  %v37_v24 = vsub.f32 %v27_v63, %v35_v6  ;;  %177 = vrot.lane.b32.xlu1 %v160_v9, %s575_s24  ;;  %175 = vrot.lane.b32.xlu0 %v159_v12, %s575_s24  ;;  %v34_v27 = vmul.f32 64.0, %v32_v5 }
  0x98   :  { %v249_v30 = vpop.xlane.xlu0 %248 }
  0x99   :  { %v39_v31 = vmul.f32 0.015873017, %v37_v24  ;;  %v36_v32 = vmul.f32 %v34_v27, %v32_v5  ;;  %v163_v34 = vmul.f32 %v756_v21, %v747_v1  ;;  %v164_v44 = vmul.f32 %v756_v21, %v742_v0 }
  0x9a   :  { %v252_v36 = vpop.xlane.xlu1 %251  ;;  %v775_v47 = vmul.f32 0.00390625, %v249_v30 }
  0x9b   :  { %v41_v37 = vadd.f32 1e-06, %v39_v31  ;;  %v38_v38 = vsub.f32 %v30_v15, %v36_v32  ;;  %179 = vrot.lane.b32.xlu1 %v161_v33, %s575_s24  ;;  %183 = vrot.lane.b32.xlu0 %v163_v34, %s575_s24  ;;  %v779_v49 = vmul.f32 0.00390625, %v252_v36 }
  0x9c   :  { %v255_v39 = vpop.xlane.xlu0 %254  ;;  %v785_v52 = vmul.f32 %v775_v47, %v775_v47 }
  0x9d   :  { %555 = vrsqrt.f32 %v41_v37  ;;  %v40_v40 = vmul.f32 0.015873017, %v38_v38  ;;  %v789_v55 = vmul.f32 %v779_v49, %v779_v49  ;;  %v791_v56 = vmul.f32 0.00390625, %v255_v39 }
  0x9e   :  { %v258_v42 = vpop.xlane.xlu1 %257  ;;  %vm45_vm1 = vcmp.eq.f32.partialorder %v41_v37, inf  ;;  %vm47_vm2 = vcmp.eq.f32.partialorder %v41_v37, 0.0  ;;  %v48_v5 = vand.u32 2147483648, %v41_v37 }
  0x9f   :  { %v42_v43 = vadd.f32 1e-06, %v40_v40  ;;  %181 = vrot.lane.b32.xlu1 %v162_v41, %s575_s24  ;;  %v795_v62 = vmul.f32 0.00390625, %v258_v42  ;;  %v807_v12 = vmul.f32 %v791_v56, %v791_v56 }
  0xa0   :  { %v261_v45 = vpop.xlane.xlu0 %260 }
  0xa1   :  { %557 = vrsqrt.f32 %v42_v43  ;;  %v803_v6 = vmul.f32 0.00390625, %v261_v45  ;;  %v817_v57 = vmul.f32 %v795_v62, %v795_v62  ;;  %vm52_vm3 = vcmp.eq.f32.partialorder %v42_v43, inf }
  0xa2   :  { %v264_v46 = vpop.xlane.xlu1 %263  ;;  %v55_v45 = vand.u32 2147483648, %v42_v43  ;;  %vm54_vm4 = vcmp.eq.f32.partialorder %v42_v43, 0.0 }
  0xa3   :  { %185 = vrot.lane.b32.xlu1 %v164_v44, %s575_s24  ;;  %v809_v15 = vmul.f32 0.00390625, %v264_v46  ;;  %v821_v58 = vmul.f32 %v803_v6, %v803_v6 }
  0xa4   :  { %v777_v48 = vpop.xlane.xlu0 %266 }
  0xa5   :  { %v825_v34 = vmul.f32 %v809_v15, %v809_v15 }
  0xa6   :  { %v781_v50 = vpop.xlane.xlu1 %269 }
  0xa7   :  { %v556_v51 = vpop.eup %555 }
  0xa8   :  { %v44_v53 = vmul.f32 %v556_v51, %v41_v37  ;;  %v289_v54 = vpop.xlane.xlu0 %288 }
  0xa9   :  { %v793_v59 = vmul.f32 0.00390625, %v289_v54 }
  0xaa   :  { %v292_v60 = vpop.xlane.xlu1 %291  ;;  %v46_v61 = vsel %vm45_vm1, %v41_v37, %v44_v53 }
  0xab   :  { %v797_v63 = vmul.f32 0.00390625, %v292_v60  ;;  %v335_v2 = vsub.f32 %v793_v59, %v785_v52  ;;  %v558_v3 = vpop.eup %557  ;;  %v49_v30 = vsel %vm47_vm2, %v48_v5, %v46_v61 }
  0xac   :  { %v295_v9 = vpop.xlane.xlu0 %294  ;;  %v51_v32 = vmul.f32 %v558_v3, %v42_v43  ;;  %v68_v33 = vrot.slane %v49_v30, %v67_v4 }
  0xad   :  { %v336_v24 = vsub.f32 %v797_v63, %v789_v55  ;;  %v813_v27 = vmul.f32 0.00390625, %v295_v9 }
  0xae   :  { %v298_v31 = vpop.xlane.xlu1 %297  ;;  %v53_v40 = vsel %vm52_vm3, %v42_v43, %v51_v32  ;;  %v93_v46 = vmul.f32 %v68_v33, %v747_v1  ;;  %v95_v61 = vmul.f32 %v68_v33, %v754_v18 }
  0xaf   :  { %v827_v36 = vmul.f32 0.00390625, %v298_v31  ;;  %v337_v37 = vsub.f32 %v813_v27, %v807_v12  ;;  %v56_v54 = vsel %vm54_vm4, %v55_v45, %v53_v40  ;;  %v94_v31 = vmul.f32 %v68_v33, %v742_v0 }
  0xb0   :  { %v301_v39 = vpop.xlane.xlu0 %300  ;;  %v102_v60 = vsel %vm101_vm5, %v93_v46, 0.0  ;;  %v72_v3 = vrot.slane %v56_v54, %v67_v4  ;;  %v108_v5 = vsel %vm101_vm5, %v95_v61, 0.0  ;;  %v96_v4 = vmul.f32 %v68_v33, %v766_v35 }
  0xb1   :  { %v338_v41 = vsub.f32 %v827_v36, %v817_v57  ;;  %v835_v44 = vmul.f32 0.00390625, %v301_v39  ;;  %v165_v46 = vmul.f32 %v756_v21, %v754_v18  ;;  %v166_v33 = vmul.f32 %v756_v21, %v766_v35 }
  0xb2   :  { %v304_v38 = vpop.xlane.xlu1 %303  ;;  %v97_v9 = vmul.f32 %v72_v3, %v747_v1  ;;  %v99_v30 = vmul.f32 %v72_v3, %v754_v18  ;;  %v98_v39 = vmul.f32 %v72_v3, %v742_v0  ;;  %v576_v54 = vmov 8  }
  0xb3   :  { %v833_v42 = vmul.f32 0.00390625, %v304_v38  ;;  %v339_v53 = vsub.f32 %v835_v44, %v821_v58  ;;  %v105_v58 = vsel %vm101_vm5, %v94_v31, 0.0  ;;  %v111_v38 = vsel %vm101_vm5, %v96_v4, 0.0  ;;  %551 = vset.pattern.permute.xlu0 %v576_v54  ;;  %552 = vset.pattern.permute.xlu1 %v576_v54 }
  0xb4   :  { %v114_v43 = vsel %vm101_vm5, %v97_v9, 0.0  ;;  %v120_v32 = vsel %vm101_vm5, %v99_v30, 0.0  ;;  %v117_v40 = vsel %vm101_vm5, %v98_v39, 0.0  ;;  %v100_v44 = vmul.f32 %v72_v3, %v766_v35  ;;  %v307_v61 = vpop.xlane.xlu0 %306 }
  0xb5   :  { %v340_v51 = vsub.f32 %v833_v42, %v825_v34  ;;  %v346_v52 = vadd.f32 1e-06, %v338_v41 }
  0xb6   :  { %v123_v45 = vsel %vm101_vm5, %v100_v44, 0.0  ;;  %v345_v44 = vadd.f32 1e-06, %v337_v37 }
  0xb7   :  { %v348_v55 = vadd.f32 1e-06, %v340_v51 }
  0xba   :  { %103 = vadd.xlane.f32.xlu0 %v102_v60  ;;  %v863_v60 = vpop.xlane.xlu1 %309 }
  0xbe   :  { %109 = vadd.xlane.f32.xlu0 %v108_v5 }
  0xc2   :  { %115 = vadd.xlane.f32.xlu0 %v114_v43 }
  0xc6   :  { %121 = vadd.xlane.f32.xlu0 %v120_v32 }
  0xc7   :  { %106 = vadd.xlane.f32.xlu1 %v105_v58 }
  0xcb   :  { %112 = vadd.xlane.f32.xlu1 %v111_v38 }
  0xcf   :  { %118 = vadd.xlane.f32.xlu1 %v117_v40  ;;  %v343_v40 = vadd.f32 1e-06, %v335_v2 }
  0xd1   :  { %559 = vrsqrt.f32 %v343_v40 }
  0xd2   :  { %561 = vrsqrt.f32 %v345_v44 }
  0xd3   :  { %124 = vadd.xlane.f32.xlu1 %v123_v45  ;;  %v347_v45 = vadd.f32 1e-06, %v339_v53 }
  0xd5   :  { %563 = vrsqrt.f32 %v347_v45 }
  0xdc   :  { %187 = vrot.lane.b32.xlu0 %v165_v46, %s575_s24 }
  0xe4   :  { %189 = vrot.lane.b32.xlu1 %v166_v33, %s575_s24  ;;  %v344_v33 = vadd.f32 1e-06, %v336_v24 }
  0xe6   :  { %565 = vrsqrt.f32 %v344_v33 }
  0xe7   :  { %567 = vrsqrt.f32 %v346_v52 }
  0xe8   :  { %569 = vrsqrt.f32 %v348_v55 }
 0x109   :  { %v178_v3 = vpop.permute.xlu1 %177  ;;  %v176_v5 = vpop.permute.xlu0 %175 }
 0x10a   :  { %v202_v9 = vsel %vm101_vm5, %v178_v3, 0.0  ;;  %v199_v43 = vsel %vm101_vm5, %v176_v5, 0.0  ;;  %v560_v3 = vpop.eup %559 }
 0x10b   :  { %203 = vadd.xlane.f32.xlu1 %v202_v9  ;;  %200 = vadd.xlane.f32.xlu0 %v199_v43  ;;  %v562_v12 = vpop.eup %561 }
 0x10c   :  { %v564_v57 = vpop.eup %563 }
 0x10d   :  { %v180_v30 = vpop.permute.xlu1 %179  ;;  %v184_v32 = vpop.permute.xlu0 %183 }
 0x10e   :  { %v205_v31 = vsel %vm101_vm5, %v180_v30, 0.0  ;;  %v211_v4 = vsel %vm101_vm5, %v184_v32, 0.0  ;;  %v566_v30 = vpop.eup %565 }
 0x10f   :  { %206 = vadd.xlane.f32.xlu0 %v205_v31  ;;  %v317_v31 = vmul.f32 0.00390625, %v777_v48 }
 0x111   :  { %v182_v21 = vpop.permute.xlu1 %181 }
 0x112   :  { %v208_v58 = vsel %vm101_vm5, %v182_v21, 0.0 }
 0x113   :  { %209 = vadd.xlane.f32.xlu0 %v208_v58  ;;  %v568_v58 = vpop.eup %567 }
 0x114   :  { %v570_v48 = vpop.eup %569 }
 0x115   :  { %v186_v38 = vpop.permute.xlu1 %185 }
 0x116   :  { %v214_v39 = vsel %vm101_vm5, %v186_v38, 0.0  ;;  %v325_v38 = vmul.f32 0.00390625, %v307_v61 }
 0x117   :  { %215 = vadd.xlane.f32.xlu1 %v214_v39  ;;  %212 = vadd.xlane.f32.xlu0 %v211_v4  ;;  %v333_v4 = vmul.f32 %v317_v31, %v317_v31 }
 0x119   :  { %v341_v45 = vsub.f32 %v325_v38, %v333_v4 }
 0x147   :  { %v104_v46 = vpop.xlane.xlu0 %103 }
 0x148   :  { %v126_v54 = vadd.f32 %v104_v46, %v747_v1 }
 0x14a   :  { %v359_v5 = vmul.f32 %v560_v3, %v126_v54  ;;  %v349_v3 = vadd.f32 1e-06, %v341_v45 }
 0x14b   :  { %v110_v9 = vpop.xlane.xlu0 %109 }
 0x14c   :  { %v128_v59 = vadd.f32 %v110_v9, %v754_v18  ;;  %v367_v2 = vmul.f32 %v359_v5, %v775_v47  ;;  %571 = vrsqrt.f32 %v349_v3 }
 0x14e   :  { %v886_v27 = vmul.f32 %v562_v12, %v128_v59  ;;  %v326_v59 = vmul.f32 0.00390625, %v863_v60 }
 0x14f   :  { %v116_v37 = vpop.xlane.xlu0 %115 }
 0x150   :  { %v130_v63 = vadd.f32 %v116_v37, %v747_v1  ;;  %v369_v24 = vmul.f32 %v886_v27, %v791_v56 }
 0x152   :  { %v363_v36 = vmul.f32 %v564_v57, %v130_v63 }
 0x153   :  { %v122_v41 = vpop.xlane.xlu0 %121 }
 0x154   :  { %v107_v53 = vpop.xlane.xlu1 %106  ;;  %v371_v47 = vmul.f32 %v363_v36, %v803_v6  ;;  %v132_v12 = vadd.f32 %v122_v41, %v754_v18 }
 0x155   :  { %v127_v43 = vadd.f32 %v107_v53, %v742_v0 }
 0x156   :  { %v572_v37 = vpop.eup %571 }
 0x157   :  { %v360_v21 = vmul.f32 %v566_v30, %v127_v43  ;;  %v188_v34 = vpop.permute.xlu0 %187  ;;  %v365_v55 = vmul.f32 %v572_v37, %v132_v12 }
 0x158   :  { %v113_v42 = vpop.xlane.xlu1 %112  ;;  %v217_v51 = vsel %vm101_vm5, %v188_v34, 0.0 }
 0x159   :  { %v129_v32 = vadd.f32 %v113_v42, %v766_v35  ;;  %218 = vadd.xlane.f32.xlu0 %v217_v51  ;;  %v368_v56 = vmul.f32 %v360_v21, %v779_v49  ;;  %v318_v49 = vmul.f32 0.00390625, %v781_v50 }
 0x15b   :  { %v362_v39 = vmul.f32 %v568_v58, %v129_v32  ;;  %v334_v61 = vmul.f32 %v318_v49, %v318_v49 }
 0x15c   :  { %v119_v6 = vpop.xlane.xlu1 %118 }
 0x15d   :  { %v131_v40 = vadd.f32 %v119_v6, %v742_v0  ;;  %v370_v44 = vmul.f32 %v362_v39, %v795_v62  ;;  %v342_v62 = vsub.f32 %v326_v59, %v334_v61 }
 0x15f   :  { %v364_v46 = vmul.f32 %v570_v48, %v131_v40  ;;  %v350_v63 = vadd.f32 1e-06, %v342_v62 }
 0x160   :  { %v125_v33 = vpop.xlane.xlu1 %124 }
 0x161   :  { %v372_v54 = vmul.f32 %v364_v46, %v809_v15  ;;  %v373_v15 = vmul.f32 %v365_v55, %v317_v31  ;;  %573 = vrsqrt.f32 %v350_v63  ;;  %v133_v50 = vadd.f32 %v125_v33, %v766_v35 }
 0x164   :  { %v190_v9 = vpop.permute.xlu1 %189 }
 0x165   :  { %v220_v52 = vsel %vm101_vm5, %v190_v9, 0.0 }
 0x166   :  { %221 = vadd.xlane.f32.xlu1 %v220_v52 }
 0x16b   :  { %v574_v60 = vpop.eup %573 }
 0x16c   :  { %v366_v57 = vmul.f32 %v574_v60, %v133_v50 }
 0x16e   :  { %v374_v41 = vmul.f32 %v366_v57, %v318_v49 }
 0x16f   :  { %383 = vrot.lane.b32.xlu0 %v367_v2, %s577_s2  ;;  %v578_v2 = vmov 9  }
 0x173   :  { %391 = vrot.lane.b32.xlu0 %v371_v47, %s577_s2 }
 0x177   :  { %385 = vrot.lane.b32.xlu1 %v368_v56, %s577_s2  ;;  %395 = vrot.lane.b32.xlu0 %v373_v15, %s577_s2 }
 0x17b   :  { %387 = vrot.lane.b32.xlu1 %v369_v24, %s577_s2  ;;  %417 = vperm.xlu0 %551, %v359_v5  }
 0x17f   :  { %389 = vrot.lane.b32.xlu1 %v370_v44, %s577_s2  ;;  %432 = vperm.xlu0 %551, %v362_v39  }
 0x183   :  { %393 = vrot.lane.b32.xlu1 %v372_v54, %s577_s2  ;;  %442 = vperm.xlu0 %551, %v364_v46  }
 0x187   :  { %397 = vrot.lane.b32.xlu1 %v374_v41, %s577_s2  ;;  %452 = vperm.xlu0 %551, %v366_v57  }
 0x18b   :  { %422 = vperm.xlu1 %552, %v360_v21   ;;  %554 = vset.pattern.permute.xlu0 %v578_v2 }
 0x18f   :  { %427 = vperm.xlu1 %552, %v886_v27  }
 0x193   :  { %437 = vperm.xlu1 %552, %v363_v36  }
 0x197   :  { %447 = vperm.xlu1 %552, %v365_v55  }
 0x198   :  { %v201_v5 = vpop.xlane.xlu0 %200  ;;  %v204_v34 = vpop.xlane.xlu1 %203 }
 0x199   :  { %v223_v30 = vadd.f32 %v201_v5, %v747_v1  ;;  %v224_v32 = vadd.f32 %v204_v34, %v742_v0 }
 0x19b   :  { %553 = vset.pattern.permute.xlu1 %v578_v2 }
 0x19c   :  { %v207_v24 = vpop.xlane.xlu0 %206 }
 0x19d   :  { %v225_v58 = vadd.f32 %v207_v24, %v754_v18 }
 0x1a0   :  { %v210_v53 = vpop.xlane.xlu0 %209 }
 0x1a1   :  { %v226_v44 = vadd.f32 %v210_v53, %v766_v35 }
 0x1a4   :  { %v213_v47 = vpop.xlane.xlu0 %212  ;;  %v216_v51 = vpop.xlane.xlu1 %215 }
 0x1a5   :  { %v227_v4 = vadd.f32 %v213_v47, %v747_v1  ;;  %v228_v54 = vadd.f32 %v216_v51, %v742_v0 }
 0x1e6   :  { %v219_v43 = vpop.xlane.xlu0 %218 }
 0x1e7   :  { %v229_v48 = vadd.f32 %v219_v43, %v754_v18 }
 0x1ea   :  { %v384_v31 = vpop.permute.xlu0 %383 }
 0x1eb   :  { %v407_v42 = vsub.f32 %v223_v30, %v384_v31 }
 0x1ed   :  { %473 = vperm.xlu1 %553, %v407_v42  }
 0x1ee   :  { %v392_v56 = vpop.permute.xlu0 %391 }
 0x1ef   :  { %v411_v39 = vsub.f32 %v227_v4, %v392_v56 }
 0x1f2   :  { %v396_v40 = vpop.permute.xlu0 %395 }
 0x1f3   :  { %v222_v21 = vpop.xlane.xlu1 %221  ;;  %v413_v46 = vsub.f32 %v229_v48, %v396_v40 }
 0x1f4   :  { %v230_v9 = vadd.f32 %v222_v21, %v766_v35 }
 0x1f7   :  { %v386_v27 = vpop.permute.xlu1 %385 }
 0x1f8   :  { %v408_v36 = vsub.f32 %v224_v32, %v386_v27 }
 0x1fa   :  { %478 = vperm.xlu0 %554, %v408_v36   ;;  %v418_v12 = vpop.permute.xlu0 %417 }
 0x1fb   :  { %v388_v38 = vpop.permute.xlu1 %387  ;;  %v455_v55 = vmul.f32 %v418_v12, %v608_v7  ;;  %v456_v0 = vmul.f32 %v418_v12, %v613_v8 }
 0x1fc   :  { %v409_v6 = vsub.f32 %v225_v58, %v388_v38 }
 0x1fe   :  { %483 = vperm.xlu1 %553, %v409_v6   ;;  %493 = vperm.xlu0 %554, %v411_v39   ;;  %v433_v37 = vpop.permute.xlu0 %432 }
 0x1ff   :  { %v390_v45 = vpop.permute.xlu1 %389 }
 0x200   :  { %v410_v33 = vsub.f32 %v226_v44, %v390_v45 }
 0x202   :  { %488 = vperm.xlu1 %553, %v410_v33   ;;  %503 = vperm.xlu0 %554, %v413_v46   ;;  %v443_v60 = vpop.permute.xlu0 %442 }
 0x203   :  { %v394_v3 = vpop.permute.xlu1 %393  ;;  %v465_v21 = vmul.f32 %v443_v60, %v666_v22  ;;  %v466_v32 = vmul.f32 %v443_v60, %v671_v23 }
 0x204   :  { %v412_v1 = vsub.f32 %v228_v54, %v394_v3 }
 0x206   :  { %498 = vperm.xlu1 %553, %v412_v1   ;;  %v453_v35 = vpop.permute.xlu0 %452 }
 0x207   :  { %v398_v52 = vpop.permute.xlu1 %397  ;;  %v469_v23 = vmul.f32 %v453_v35, %v690_v28  ;;  %v470_v36 = vmul.f32 %v453_v35, %v695_v29 }
 0x208   :  { %v414_v49 = vsub.f32 %v230_v9, %v398_v52 }
 0x20a   :  { %508 = vperm.xlu1 %553, %v414_v49  }
 0x20b   :  { %v423_v61 = vpop.permute.xlu1 %422 }
 0x20c   :  { %v457_v57 = vmul.f32 %v423_v61, %v618_v10  ;;  %v458_v41 = vmul.f32 %v423_v61, %v623_v11 }
 0x20f   :  { %v428_v59 = vpop.permute.xlu1 %427 }
 0x210   :  { %v459_v5 = vmul.f32 %v428_v59, %v630_v13  ;;  %v460_v24 = vmul.f32 %v428_v59, %v635_v14  ;;  %v461_v14 = vmul.f32 %v433_v37, %v642_v16 }
 0x213   :  { %v438_v18 = vpop.permute.xlu1 %437 }
 0x214   :  { %v463_v53 = vmul.f32 %v438_v18, %v654_v19  ;;  %v464_v47 = vmul.f32 %v438_v18, %v659_v20  ;;  %v462_v19 = vmul.f32 %v433_v37, %v647_v17 }
 0x217   :  { %v448_v62 = vpop.permute.xlu1 %447 }
 0x218   :  { %v467_v20 = vmul.f32 %v448_v62, %v678_v25  ;;  %v468_v34 = vmul.f32 %v448_v62, %v683_v26 }
 0x26c   :  { %v474_v63 = vpop.permute.xlu1 %473 }
 0x26d   :  { %v511_v15 = vadd.f32 %v474_v63, %v455_v55  ;;  %v512_v50 = vadd.f32 %v474_v63, %v456_v0 }
 0x26f   :  { %527 = vst [vmem:[%s984_s3] sm:$0xff] %v511_v15  ;;  %528 = vst [vmem:[%s984_s3 + $0x8] sm:$0xff] %v512_v50 }
 0x279   :  { %v479_v7 = vpop.permute.xlu0 %478 }
 0x27a   :  { %v513_v2 = vadd.f32 %v479_v7, %v457_v57  ;;  %v514_v8 = vadd.f32 %v479_v7, %v458_v41 }
 0x27c   :  { %529 = vst [vmem:[%s984_s3 + $0x10] sm:$0xff] %v513_v2  ;;  %530 = vst [vmem:[%s984_s3 + $0x18] sm:$0xff] %v514_v8 }
 0x27d   :  { %v484_v10 = vpop.permute.xlu1 %483  ;;  %v494_v11 = vpop.permute.xlu0 %493 }
 0x27e   :  { %v515_v43 = vadd.f32 %v484_v10, %v459_v5  ;;  %v516_v30 = vadd.f32 %v484_v10, %v460_v24  ;;  %v519_v31 = vadd.f32 %v494_v11, %v463_v53  ;;  %v520_v13 = vadd.f32 %v494_v11, %v464_v47 }
 0x280   :  { %531 = vst [vmem:[%s984_s3 + $0x20] sm:$0xff] %v515_v43  ;;  %532 = vst [vmem:[%s984_s3 + $0x28] sm:$0xff] %v516_v30 }
 0x281   :  { %535 = vst [vmem:[%s984_s3 + $0x40] sm:$0xff] %v519_v31  ;;  %536 = vst [vmem:[%s984_s3 + $0x48] sm:$0xff] %v520_v13  ;;  %v489_v16 = vpop.permute.xlu1 %488  ;;  %v504_v17 = vpop.permute.xlu0 %503 }
 0x282   :  { %v517_v25 = vadd.f32 %v489_v16, %v461_v14  ;;  %v518_v26 = vadd.f32 %v489_v16, %v462_v19  ;;  %v523_v42 = vadd.f32 %v504_v17, %v467_v20  ;;  %v524_v51 = vadd.f32 %v504_v17, %v468_v34 }
 0x284   :  { %533 = vst [vmem:[%s984_s3 + $0x30] sm:$0xff] %v517_v25  ;;  %534 = vst [vmem:[%s984_s3 + $0x38] sm:$0xff] %v518_v26 }
 0x285   :  { %539 = vst [vmem:[%s984_s3 + $0x60] sm:$0xff] %v523_v42  ;;  %540 = vst [vmem:[%s984_s3 + $0x68] sm:$0xff] %v524_v51  ;;  %v499_v56 = vpop.permute.xlu1 %498 }
 0x286   :  { %v521_v22 = vadd.f32 %v499_v56, %v465_v21  ;;  %v522_v27 = vadd.f32 %v499_v56, %v466_v32 }
 0x288   :  { %537 = vst [vmem:[%s984_s3 + $0x50] sm:$0xff] %v521_v22  ;;  %538 = vst [vmem:[%s984_s3 + $0x58] sm:$0xff] %v522_v27 }
 0x289   :  { %v509_v58 = vpop.permute.xlu1 %508 }
 0x28a   :  { %v525_v4 = vadd.f32 %v509_v58, %v469_v23  ;;  %v526_v38 = vadd.f32 %v509_v58, %v470_v36 }
 0x28c   :  { %541 = vst [vmem:[%s984_s3 + $0x70] sm:$0xff] %v525_v4  ;;  %542 = vst [vmem:[%s984_s3 + $0x78] sm:$0xff] %v526_v38 }

</bundles_post_ra>
